<compile_context>
chip_gen: v6e
topology: v6e:2x2x1
jax: 0.10.0
libtpu: 0.0.40
codegen_flags: <defaults>
</compile_context>

<pallas_src>
import math
import functools

import jax
import jax.numpy as jnp
from jax import lax
from jax.experimental import pallas as pl
from jax.experimental.pallas import tpu as pltpu


def _arcface_kernel(emb_ref, w_ref, lab_ref, out_ref, s_inv_wnorm_ref, *,
                    s, cos_m, sin_m, tb, tc):
    j = pl.program_id(0)        # C tile (outer -> weight tile resident)
    i = pl.program_id(1)        # B tile (inner)

    # Per-class s / ||w_col||, computed once per weight tile, reused across all
    # B tiles of this C tile.  Cast to f32 once for an accurate reduction.
    @pl.when(i == 0)
    def _():
        w32 = w_ref[...].astype(jnp.float32)
        s_inv_wnorm_ref[...] = s * lax.rsqrt(
            jnp.sum(w32 * w32, axis=0, keepdims=True))

    row0 = pl.multiple_of(i * tb, tb)
    emb = emb_ref[pl.ds(row0, tb), :]      # (tb, D), L2-normalized, MXU dtype
    lab = lab_ref[pl.ds(row0, tb), :]      # (tb, 1) int32

    # MXU matmul on the raw (un-normalized) weight tile; fold s/||w_col|| in
    # afterwards (identical to normalizing columns first, then scaling by s).
    raw = jnp.dot(emb, w_ref[...], preferred_element_type=jnp.float32)
    scaled = jnp.clip(raw * s_inv_wnorm_ref[...], -s, s)      # = s * cos(theta)

    # Additive angular margin only for rows whose label lands in this C tile.
    lo = j * tc
    hit = (lab != -1) & (lab >= lo) & (lab < lo + tc)          # (tb, 1) bool
    hit_any = jnp.any(hit)

    @pl.when(jnp.logical_not(hit_any))
    def _():
        out_ref[...] = scaled

    @pl.when(hit_any)
    def _():
        col = lax.broadcasted_iota(jnp.int32, scaled.shape, 1) + lo
        mask = hit & (col == lab)                              # (tb, tc)
        cos_t = scaled * (1.0 / s)
        sin_t = jnp.sqrt(jnp.maximum(1.0 - cos_t * cos_t, 0.0))
        # s * cos(theta + m) = scaled*cos(m) - sin(theta)*(s*sin(m))
        out_ref[...] = jnp.where(mask, scaled * cos_m - sin_t * (s * sin_m),
                                 scaled)


def arcface_forward(embeddings, kernel, label, *, s=64.0, m=0.5,
                    block_b=256, block_c=2048, mxu_dtype=jnp.float32):
    """embeddings: (B, D) f32; kernel: (D, C) f32; label: (B,) int (-1 = no margin)."""
    B, D = embeddings.shape
    D2, C = kernel.shape
    assert D == D2

    tb = min(block_b, B)
    tc = min(block_c, C)
    assert B % tb == 0 and C % tc == 0, "pick tile sizes dividing (B, C)"
    assert (tb % 8 == 0) or (tb == B)
    assert (tc % 128 == 0) or (tc == C)

    # Normalize embeddings once in plain XLA (cost ~B*D, negligible vs D*C) and
    # pre-cast BOTH MXU operands so bf16 actually shrinks the streamed HBM bytes.
    inv_e = lax.rsqrt(jnp.sum(embeddings * embeddings, axis=1, keepdims=True))
    emb_n = (embeddings * inv_e).astype(mxu_dtype)
    w = kernel.astype(mxu_dtype)
    label2d = label.astype(jnp.int32).reshape(B, 1)

    kern = functools.partial(
        _arcface_kernel, s=float(s), cos_m=math.cos(m), sin_m=math.sin(m),
        tb=tb, tc=tc)

    w_elem = jnp.dtype(mxu_dtype).itemsize
    vmem_need = (
        2 * w_elem * B * D          # resident embeddings (buffered)
        + 2 * 4 * B                 # resident labels
        + 2 * w_elem * D * tc       # double-buffered weight tile
        + 4 * D * tc                # f32 copy for the fused column-norm reduce
        + 2 * 4 * tb * tc           # double-buffered output tile
        + 4 * tc                    # (1, tc) scratch
        + 6 * 4 * tb * tc)          # f32 epilogue temporaries
    try:
        vmem_cap = pltpu.get_tpu_info().vmem_capacity_bytes
    except Exception:  # pragma: no cover - conservative fallback (v7x per-TC size)
        vmem_cap = 64 * 1024 * 1024
    vmem_limit = int(min(max(vmem_need + (2 << 20), 32 << 20),
                         int(0.75 * vmem_cap)))

    cost = pl.CostEstimate(
        flops=2 * B * C * D,
        # W read once, embeddings/labels once, output written once.
        bytes_accessed=w_elem * (D * C + B * D) + 4 * (B * C + B + C),
        transcendentals=C + B * tc,
    )

    return pl.pallas_call(
        kern,
        out_shape=jax.ShapeDtypeStruct((B, C), jnp.float32),
        grid=(C // tc, B // tb),               # C tiles OUTER -> W streamed once
        in_specs=[
            pl.BlockSpec((B, D), lambda j, i: (0, 0)),    # embeddings, resident
            pl.BlockSpec((D, tc), lambda j, i: (0, j)),   # weight tile, outer only
            pl.BlockSpec((B, 1), lambda j, i: (0, 0)),    # labels, resident
        ],
        out_specs=pl.BlockSpec((tb, tc), lambda j, i: (i, j)),
        scratch_shapes=[pltpu.VMEM((1, tc), jnp.float32)],
        compiler_params=pltpu.CompilerParams(
            dimension_semantics=("parallel", "arbitrary"),
            vmem_limit_bytes=vmem_limit),
        cost_estimate=cost,
    )(emb_n, w, label2d)


def _reference(embeddings, kernel, label, s=64.0, m=0.5):
    emb = embeddings / jnp.linalg.norm(embeddings, axis=1, keepdims=True)
    ker = kernel / jnp.linalg.norm(kernel, axis=0, keepdims=True)
    cos_t = jnp.clip(emb @ ker, -1.0, 1.0)
    theta = jnp.arccos(cos_t)
    col = jnp.arange(cos_t.shape[1])[None, :]
    mask = (label[:, None] != -1) & (col == label[:, None])
    theta = theta + m * mask
    return s * jnp.cos(theta)


if __name__ == "__main__":
    key = jax.random.PRNGKey(0)
    B, in_features, out_features = 16, 128, 512

    k_emb, k_w = jax.random.split(key)
    embeddings = jax.random.normal(k_emb, (B, in_features), dtype=jnp.float32)
    # nn.init.normal_(self.kernel, std=0.01)
    kernel = 0.01 * jax.random.normal(
        k_w, (in_features, out_features), dtype=jnp.float32)
    # labels spread across several C tiles, plus rows without a margin (-1)
    label = jnp.array([3, -1, 200, 0, 511, -1, 130, 384,
                       129, 255, -1, 7, 448, 300, 64, 383], dtype=jnp.int32)

    ref = _reference(embeddings, kernel, label, s=64.0, m=0.5)

    # Small tiles so the test exercises a real (4 x 2) grid, the C-tile offset in
    # the margin epilogue, and the fused per-C-tile column-norm scratch.
    out = arcface_forward(embeddings, kernel, label, s=64.0, m=0.5,
                          block_b=8, block_c=128)
    out = jax.block_until_ready(out)
    assert out.shape == (B, out_features)
    assert jnp.allclose(out, ref, atol=1e-3, rtol=1e-3)

    # bf16 streamed operands (f32 accumulation / f32 epilogue): truly halves the
    # weight HBM bytes now that the cast happens before pallas_call.  s=64
    # amplifies bf16 rounding, so use a loose tolerance.
    out_bf16 = arcface_forward(embeddings, kernel, label, s=64.0, m=0.5,
                               block_b=8, block_c=128, mxu_dtype=jnp.bfloat16)
    out_bf16 = jax.block_until_ready(out_bf16)
    assert jnp.allclose(out_bf16, ref, atol=0.5, rtol=0.0)

    print("KERNEL_OK")
</pallas_src>

<mosaic_0001>
module attributes {stable_mosaic.version = 11 : i64} {
  func.func @_arcface_kernel(%arg0: i32, %arg1: i32, %arg2: memref<16x128xf32, #tpu.memory_space<vmem>>, %arg3: memref<128x128xf32, #tpu.memory_space<vmem>>, %arg4: memref<16x1xi32, #tpu.memory_space<vmem>>, %arg5: memref<8x128xf32, #tpu.memory_space<vmem>>, %arg6: memref<1x128xf32, #tpu.memory_space<vmem>>) attributes {dimension_semantics = [#tpu.dimension_semantics<parallel>, #tpu.dimension_semantics<arbitrary>], iteration_bounds = array<i64: 4, 2>, scalar_prefetch = 0 : i64, scratch_operands = 1 : i64, tpu.core_type = #tpu.core_type<tc>, window_params = [{pipeline_mode = #tpu.pipeline_mode<synchronous>, transform_indices = @transform_0, window_bounds = array<i64: 16, 128>}, {transform_indices = @transform_1, window_bounds = array<i64: 128, 128>}, {pipeline_mode = #tpu.pipeline_mode<synchronous>, transform_indices = @transform_2, window_bounds = array<i64: 16, 1>}, {transform_indices = @transform_3, window_bounds = array<i64: 8, 128>}]} {
    %c0_i32 = arith.constant 0 : i32
    %0 = arith.cmpi eq, %arg1, %c0_i32 : i32
    %1 = arith.extui %0 : i1 to i32
    %c0_i32_0 = arith.constant 0 : i32
    %2 = arith.cmpi ne, %1, %c0_i32_0 : i32
    scf.if %2 {
      %c0_15 = arith.constant 0 : index
      %c0_16 = arith.constant 0 : index
      %41 = vector.load %arg3[%c0_15, %c0_16] : memref<128x128xf32, #tpu.memory_space<vmem>>, vector<128x128xf32>
      %42 = arith.mulf %41, %41 : vector<128x128xf32>
      %cst_17 = arith.constant dense<0.000000e+00> : vector<128xf32>
      %43 = vector.multi_reduction <add>, %42, %cst_17 [0] : vector<128x128xf32> to vector<128xf32>
      %44 = vector.shape_cast %43 : vector<128xf32> to vector<1x128xf32>
      %45 = math.rsqrt %44 : vector<1x128xf32>
      %cst_18 = arith.constant 6.400000e+01 : f32
      %46 = vector.broadcast %cst_18 : f32 to vector<1x128xf32>
      %47 = arith.mulf %46, %45 : vector<1x128xf32>
      %c0_19 = arith.constant 0 : index
      %c0_20 = arith.constant 0 : index
      %48 = vector.load %arg6[%c0_19, %c0_20] : memref<1x128xf32, #tpu.memory_space<vmem>>, vector<1x128xf32>
      tpu.vector_store %arg6[%c0_19, %c0_20], %47 {strides = array<i32>} : memref<1x128xf32, #tpu.memory_space<vmem>>, vector<1x128xf32>,
    } else {
    }
    %c8_i32 = arith.constant 8 : i32
    %3 = arith.muli %arg1, %c8_i32 : i32
    %4 = tpu.assume_multiple %3, 8 : i32
    %5 = arith.index_cast %4 : i32 to index
    %c0 = arith.constant 0 : index
    %6 = vector.load %arg2[%5, %c0] : memref<16x128xf32, #tpu.memory_space<vmem>>, vector<8x128xf32>
    %7 = arith.index_cast %4 : i32 to index
    %c0_1 = arith.constant 0 : index
    %8 = vector.load %arg4[%7, %c0_1] : memref<16x1xi32, #tpu.memory_space<vmem>>, vector<8x1xi32>
    %c0_2 = arith.constant 0 : index
    %c0_3 = arith.constant 0 : index
    %9 = vector.load %arg3[%c0_2, %c0_3] : memref<128x128xf32, #tpu.memory_space<vmem>>, vector<128x128xf32>
    %cst = arith.constant dense<0.000000e+00> : vector<8x128xf32>
    %10 = tpu.matmul %6, %9, %cst {dimension_numbers = #tpu.dot_dimension_numbers<[1], [0], [0], [1], [0, 0, 1, 1], [], []>} : vector<8x128xf32>, vector<128x128xf32>, vector<8x128xf32> -> vector<8x128xf32>
    %c0_4 = arith.constant 0 : index
    %c0_5 = arith.constant 0 : index
    %11 = vector.load %arg6[%c0_4, %c0_5] : memref<1x128xf32, #tpu.memory_space<vmem>>, vector<1x128xf32>
    %12 = vector.broadcast %11 : vector<1x128xf32> to vector<8x128xf32>
    %13 = arith.mulf %10, %12 : vector<8x128xf32>
    %cst_6 = arith.constant -6.400000e+01 : f32
    %cst_7 = arith.constant 6.400000e+01 : f32
    %14 = vector.broadcast %cst_6 : f32 to vector<8x128xf32>
    %15 = arith.maximumf %14, %13 : vector<8x128xf32>
    %16 = vector.broadcast %cst_7 : f32 to vector<8x128xf32>
    %17 = arith.minimumf %16, %15 : vector<8x128xf32>
    %c128_i32 = arith.constant 128 : i32
    %18 = arith.muli %arg0, %c128_i32 : i32
    %c-1_i32 = arith.constant -1 : i32
    %19 = vector.broadcast %c-1_i32 : i32 to vector<8x1xi32>
    %20 = arith.cmpi ne, %8, %19 : vector<8x1xi32>
    %21 = vector.broadcast %18 : i32 to vector<8x1xi32>
    %22 = arith.cmpi sge, %8, %21 : vector<8x1xi32>
    %23 = arith.andi %20, %22 : vector<8x1xi1>
    %c128_i32_8 = arith.constant 128 : i32
    %24 = arith.addi %18, %c128_i32_8 : i32
    %25 = vector.broadcast %24 : i32 to vector<8x1xi32>
    %26 = arith.cmpi slt, %8, %25 : vector<8x1xi32>
    %27 = arith.andi %23, %26 : vector<8x1xi1>
    %cst_9 = arith.constant 1.000000e+00 : f32
    %cst_10 = arith.constant 0.000000e+00 : f32
    %28 = vector.broadcast %cst_9 : f32 to vector<8x1xf32>
    %29 = vector.broadcast %cst_10 : f32 to vector<8x1xf32>
    %30 = arith.select %27, %28, %29 : vector<8x1xi1>, vector<8x1xf32>
    %31 = vector.shape_cast %30 : vector<8x1xf32> to vector<1x8x1xf32>
    %cst_11 = arith.constant dense<0xFF800000> : vector<1xf32>
    %32 = vector.multi_reduction <maximumf>, %31, %cst_11 [1, 2] : vector<1x8x1xf32> to vector<1xf32>
    %33 = vector.shape_cast %32 : vector<1xf32> to vector<1x1x1xf32>
    %34 = vector.extract %33[0, 0, 0] : f32 from vector<1x1x1xf32>
    %cst_12 = arith.constant 0.000000e+00 : f32
    %35 = arith.cmpf ogt, %34, %cst_12 : f32
    %true = arith.constant true
    %36 = arith.xori %35, %true : i1
    %37 = arith.extui %36 : i1 to i32
    %c0_i32_13 = arith.constant 0 : i32
    %38 = arith.cmpi ne, %37, %c0_i32_13 : i32
    scf.if %38 {
      %c0_15 = arith.constant 0 : index
      %c0_16 = arith.constant 0 : index
      %41 = vector.load %arg5[%c0_15, %c0_16] : memref<8x128xf32, #tpu.memory_space<vmem>>, vector<8x128xf32>
      tpu.vector_store %arg5[%c0_15, %c0_16], %17 {strides = array<i32>} : memref<8x128xf32, #tpu.memory_space<vmem>>, vector<8x128xf32>,
    } else {
    }
    %39 = arith.extui %35 : i1 to i32
    %c0_i32_14 = arith.constant 0 : i32
    %40 = arith.cmpi ne, %39, %c0_i32_14 : i32
    scf.if %40 {
      %41 = tpu.iota {dimensions = array<i32: 1>} : vector<8x128xi32>
      %42 = vector.broadcast %18 : i32 to vector<8x128xi32>
      %43 = arith.addi %41, %42 : vector<8x128xi32>
      %44 = vector.broadcast %8 : vector<8x1xi32> to vector<8x128xi32>
      %45 = arith.cmpi eq, %43, %44 : vector<8x128xi32>
      %46 = vector.broadcast %27 : vector<8x1xi1> to vector<8x128xi1>
      %47 = arith.andi %46, %45 : vector<8x128xi1>
      %cst_15 = arith.constant 1.562500e-02 : f32
      %48 = vector.broadcast %cst_15 : f32 to vector<8x128xf32>
      %49 = arith.mulf %17, %48 : vector<8x128xf32>
      %50 = arith.mulf %49, %49 : vector<8x128xf32>
      %cst_16 = arith.constant 1.000000e+00 : f32
      %51 = vector.broadcast %cst_16 : f32 to vector<8x128xf32>
      %52 = arith.subf %51, %50 : vector<8x128xf32>
      %cst_17 = arith.constant 0.000000e+00 : f32
      %53 = vector.broadcast %cst_17 : f32 to vector<8x128xf32>
      %54 = arith.maximumf %52, %53 : vector<8x128xf32>
      %55 = math.sqrt %54 : vector<8x128xf32>
      %cst_18 = arith.constant 0.87758255 : f32
      %56 = vector.broadcast %cst_18 : f32 to vector<8x128xf32>
      %57 = arith.mulf %17, %56 : vector<8x128xf32>
      %cst_19 = arith.constant 30.6832352 : f32
      %58 = vector.broadcast %cst_19 : f32 to vector<8x128xf32>
      %59 = arith.mulf %55, %58 : vector<8x128xf32>
      %60 = arith.subf %57, %59 : vector<8x128xf32>
      %61 = arith.select %47, %60, %17 : vector<8x128xi1>, vector<8x128xf32>
      %c0_20 = arith.constant 0 : index
      %c0_21 = arith.constant 0 : index
      %62 = vector.load %arg5[%c0_20, %c0_21] : memref<8x128xf32, #tpu.memory_space<vmem>>, vector<8x128xf32>
      tpu.vector_store %arg5[%c0_20, %c0_21], %61 {strides = array<i32>} : memref<8x128xf32, #tpu.memory_space<vmem>>, vector<8x128xf32>,
    } else {
    }
    return
  }
  func.func @transform_0(%arg0: i32, %arg1: i32) -> (i32, i32) {
    %c0_i32 = arith.constant 0 : i32
    %c0_i32_0 = arith.constant 0 : i32
    %c0_i32_1 = arith.constant 0 : i32
    return %c0_i32, %c0_i32_0 : i32, i32
  }
  func.func @transform_1(%arg0: i32, %arg1: i32) -> (i32, i32) {
    %c0_i32 = arith.constant 0 : i32
    %c0_i32_0 = arith.constant 0 : i32
    return %c0_i32, %arg0 : i32, i32
  }
  func.func @transform_2(%arg0: i32, %arg1: i32) -> (i32, i32) {
    %c0_i32 = arith.constant 0 : i32
    %c0_i32_0 = arith.constant 0 : i32
    %c0_i32_1 = arith.constant 0 : i32
    return %c0_i32, %c0_i32_0 : i32, i32
  }
  func.func @transform_3(%arg0: i32, %arg1: i32) -> (i32, i32) {
    %c0_i32 = arith.constant 0 : i32
    return %arg1, %arg0 : i32, i32
  }
}

</mosaic_0001>

<bundles_post_ra>
// kernel: tpu_custom_call.1
= control target key start
LH: loop header
LB: loop body
LE: loop exit
PB: predicated region body
PF: predicated region fallthrough
CT: control target
= control target key end

     0   :  { %8 = vsyncpa [#allocation4], 0  ;;  %s1177_s0 = inlined_call_operand.vmem [shape: f32[16,128], index: 0, kind: input, shape index: {}]   ;;  %s1178_s1 = inlined_call_operand.hbm [shape: f32[128,512], index: 1, kind: input, shape index: {}]   ;;  %s1179_s2 = inlined_call_operand.vmem [shape: s32[16,1], index: 2, kind: input, shape index: {}]   ;;  %s1180_s3 = inlined_call_operand.hbm [shape: f32[16,512], index: 3, kind: output, shape index: {}]  }
   0x1   :  { %10 = vsyncpa [#allocation4 + $0x1], 0 }
   0x2   :  { %11 = vsyncpa [#allocation5], 0 }
   0x3   :  { %13 = vsyncpa [#allocation5 + $0x1], 0  ;;  %s888_s12 = smov 0   ;;  %s890_s13 = smov 0  }
   0x4   :  { %s892_s14 = smov 0   ;;  %s894_s15 = smov 0  }
   0x5   :  { %s896_s16 = smov 0   ;;  %s898_s17 = smov 0  }
   0x6   :  { %s900_s18 = smov 0   ;;  %s902_s19 = smov 0  }
   0x7   :  { %s904_s20 = smov 0   ;;  %s906_s21 = smov 0  }
   0x8   :  { %s908_s22 = smov 0  }
   0x9 LB: > { %1185 = sst [smem:[#allocation9_spill]] %s850_s20  ;;  %s524_s23 = sadd.s32 4294967295, %s858_s22   ;;  %s858_s22 = sphi %s908_s22, %s19_s22   ;;  %s854_s21 = sphi %s906_s21, %s1201_s21   ;;  %s850_s20 = sphi %s904_s20, %s1200_s20   ;;  %s846_s19 = sphi %s902_s19, %s1199_s19   ;;  %s842_s18 = sphi %s900_s18, %s1198_s18   ;;  %s838_s17 = sphi %s898_s17, %s1207_s17   ;;  %s834_s16 = sphi %s896_s16, %s1206_s16   ;;  %s830_s15 = sphi %s894_s15, %s1205_s15   ;;  %s826_s14 = sphi %s892_s14, %s1204_s14   ;;  %s822_s13 = sphi %s890_s13, %s1203_s13   ;;  %s818_s12 = sphi %s888_s12, %s1202_s12  }
   0xa   : > { %1186 = sst [smem:[#allocation10_spill]] %s854_s21  ;;  %s525_s24 = sadd.s32 4294967294, %s858_s22  }
   0xb   : > { %s28_s25 = sadd.s32 1, %s850_s20  ;;  %s31_s26 = sadd.s32 1, %s854_s21 }
   0xc   : > { %p29_p0 = scmp.ge.s32.totalorder %s28_s25, 2  ;;  %s59_s27 = sadd.s32 1, %s838_s17 }
   0xd   : > { %p66_p1 = scmp.ne.s32.totalorder %s838_s17, %s834_s16  ;;  %p67_p2 = scmp.eq.s32.totalorder %s858_s22, 0 }
   0xe   : > { %s1209_s25 = smov (%p29_p0, %s28_s25), 0  ;;  %s1211_s26 = smov (!%p29_p0, %s31_s26), %s854_s21 }
   0xf   : > { %1187 = sst [smem:[#allocation11_spill]] %s1209_s25  ;;  %p952_p3 = por %p67_p2, %p66_p1 }
  0x10   : > { %p72_p4 = scmp.ne.s32.totalorder %s834_s16, %s830_s15  ;;  %p33_p5 = scmp.ge.s32.totalorder %s1211_s26, 4 }
  0x11   : > { %p73_p6 = scmp.eq.s32.totalorder %s524_s23, 0  ;;  %s103_s29 = ssub.s32 %s850_s20, %s1209_s25 }
  0x12   : > { %s108_s30 = sadd.s32 1, %s826_s14  ;;  %s1213_s26 = smov (%p33_p5, %s1211_s26), 0 }
  0x13   : > { %1189 = sst [smem:[#allocation12_spill]] %s1213_s26  ;;  %p962_p7 = por %p73_p6, %p72_p4 }
  0x14   : > { %p118_p8 = scmp.ne.s32.totalorder %s826_s14, %s822_s13  ;;  %s56_s5 = ssub.s32 %s854_s21, %s1213_s26 }
  0x15   : > { %p119_p9 = scmp.eq.s32.totalorder %s524_s23, 7  ;;  %p57_p10 = scmp.eq.s32.totalorder %s56_s5, 0 }
  0x16   : > { %s105_s6 = sor.u32 %s103_s29, %s56_s5  ;;  %p124_p13 = scmp.ne.s32.totalorder %s822_s13, %s818_s12 }
  0x17   : > { %p106_p11 = scmp.eq.s32.totalorder %s105_s6, 0  ;;  %p970_p12 = por %p119_p9, %p118_p8 }
  0x18   : > { %s975_s8 = scalar_select %p57_p10, %s838_s17, %s59_s27  }
  0x19   : > { %s978_s9 = scalar_select %p106_p11, %s826_s14, %s108_s30  }
  0x1a   : > { %p125_p0 = scmp.eq.s32.totalorder %s525_s24, 7  ;;  %p609_p1 = scmp.lt.s32.totalorder %s858_s22, 8 }
  0x1b   : > { %s151_s11 = sand.u32 1, %s838_s17   ;;  %s529_s23 = sshll.u32 %s854_s21, 7 }
  0x1c   : > { %p983_p2 = por %p125_p0, %p124_p13  ;;  %s528_s15 = sshll.u32 %s151_s11, 7 }
  0x1d   : > { %s160_s6 = scalar_lea.hbm %s1178_s1, %s529_s23  ;;  %s155_s26 = scalar_lea.vmem [#allocation3], %s528_s15 }
  0x1e   : > { %s161_s25 = sshll.u32 %s155_s26, 4  ;;  %p994_p4 = pnand %p609_p1, %p952_p3  ;;  %s162_s25 = int_to_ptr.vmem [resolvable:$true] %s161_s25 }
  0x1f   : > { %s152_s24 = scalar_lea.sflag [#allocation4], %s151_s11  ;;  %s723_s30 = scalar_lea.vmem %s162_s25, 2048 }
  0x20   : > { %p712_p5 = pneg %p994_p4  ;;  %p724_p6 = scmp.ne.s32.totalorder %s162_s25, %s723_s30 }
  0x21   : > { %s860_s21 = smov [#allocation3]  }
  0x22   : > { %p726_p8 = pnand %p724_p6, %p712_p5  ;;  %s728_s20 = sshll.u32 %s860_s21, 4  ;;  %s729_s20 = int_to_ptr.vmem [resolvable:$false] %s728_s20 }
  0x23   : > { %s730_s23 = scalar_lea.vmem %s729_s20, 4096  ;;  %p731_p10 = scmp.lt.s32.totalorder %s162_s25, %s729_s20 }
  0x24   : > { %p727_p9 = pneg %p726_p8  ;;  %p732_p11 = scmp.lt.s32.totalorder %s730_s23, %s723_s30 }
  0x26   : > { %p733_p13 = por %p732_p11, %p731_p10 }
  0x28   : > { %p734_p0 = pnand %p733_p13, %p727_p9 }
  0x2a   : > { %737 = shalt.err (!%p734_p0)
}
  0x2b   : > { %s861_s26 = smov 512   ;;  %s862_s28 = smov 128  }
  0x2c   : > { %s863_s11 = smov 8   ;;  %p530_p3 = scmp.ge.s32.totalorder %s858_s22, 1 }
  0x2d   : > { %604 = dma.hbm_to_vmem [thread:$0]  (!%p994_p4), %s160_s6, 2048, %s162_s25, %s152_s24, %s861_s26, %s862_s28, %s863_s11  }
  0x2e   : > { %p169_p1 = scmp.lt.s32.totalorder %s858_s22, 9 }
  0x30   : > { %p170_p5 = pnand %p530_p3, %p169_p1 }
  0x31   : > { %s175_s21 = sand.u32 (!%p170_p5), 1, %s834_s16  }
  0x32   : > { %173 = sbr.rel (%p170_p5) target bundleno = 499 (0x1f3), region = 32  ;;  %s531_s20 = sshll.u32 (!%p170_p5), %s175_s21, 7 }
  0x33   : > { %s176_s15 = scalar_lea.sflag (!%p170_p5), [#allocation4], %s175_s21  ;;  %s1005_s29 = scalar_lea.vmem (!%p170_p5), [#allocation3], %s531_s20 }
  0x37   : > { %809 = dma.done.wait (%p962_p7), %s176_s15, 2048  }
  0x38   : > { %811 = vsyncadd (%p962_p7), %s176_s15, 4294965248  ;;  %s199_s5 = sand.u32 1, %s822_s13   ;;  %p533_p4 = scmp.ne.s32.totalorder %s842_s18, 0 }
  0x39   : > { %s532_s25 = sshll.u32 %s199_s5, 3 }
  0x3a   : > { %s1014_s6 = scalar_lea.vmem [#allocation6], %s532_s25  ;;  %205 = sbr.rel (%p533_p4) target bundleno = 125 (0x7d), region = 40 }
  0x3f   : > { %v206_v0 = vld [vmem:[%s1005_s29] sm:$0xff]  ;;  %v207_v1 = vld [vmem:[%s1005_s29 + $0x8] sm:$0xff]  ;;  %v208_v2 = vld [vmem:[%s1005_s29 + $0x10] sm:$0xff] }
  0x40   : > { %v209_v3 = vld [vmem:[%s1005_s29 + $0x18] sm:$0xff]  ;;  %v222_v4 = vmul.f32 %v206_v0, %v206_v0  ;;  %v223_v5 = vmul.f32 %v207_v1, %v207_v1  ;;  %v224_v6 = vmul.f32 %v208_v2, %v208_v2  ;;  %v210_v7 = vld [vmem:[%s1005_s29 + $0x20] sm:$0xff]  ;;  %v211_v10 = vld [vmem:[%s1005_s29 + $0x28] sm:$0xff] }
  0x41   : > { %v225_v8 = vmul.f32 %v209_v3, %v209_v3  ;;  %v226_v11 = vmul.f32 %v210_v7, %v210_v7  ;;  %v212_v13 = vld [vmem:[%s1005_s29 + $0x30] sm:$0xff]  ;;  %v227_v14 = vmul.f32 %v211_v10, %v211_v10  ;;  %v213_v16 = vld [vmem:[%s1005_s29 + $0x38] sm:$0xff]  ;;  %v214_v19 = vld [vmem:[%s1005_s29 + $0x40] sm:$0xff] }
  0x42   : > { %v238_v9 = vadd.f32 %v223_v5, %v222_v4  ;;  %v228_v17 = vmul.f32 %v212_v13, %v212_v13  ;;  %v229_v20 = vmul.f32 %v213_v16, %v213_v16  ;;  %v215_v22 = vld [vmem:[%s1005_s29 + $0x48] sm:$0xff]  ;;  %v230_v23 = vmul.f32 %v214_v19, %v214_v19  ;;  %v216_v25 = vld [vmem:[%s1005_s29 + $0x50] sm:$0xff]  ;;  %v217_v28 = vld [vmem:[%s1005_s29 + $0x58] sm:$0xff] }
  0x43   : > { %v231_v26 = vmul.f32 %v215_v22, %v215_v22  ;;  %v232_v29 = vmul.f32 %v216_v25, %v216_v25  ;;  %v218_v31 = vld [vmem:[%s1005_s29 + $0x60] sm:$0xff]  ;;  %v233_v32 = vmul.f32 %v217_v28, %v217_v28  ;;  %v219_v34 = vld [vmem:[%s1005_s29 + $0x68] sm:$0xff]  ;;  %v220_v37 = vld [vmem:[%s1005_s29 + $0x70] sm:$0xff] }
  0x44   : > { %v239_v12 = vadd.f32 %v238_v9, %v224_v6  ;;  %v234_v35 = vmul.f32 %v218_v31, %v218_v31  ;;  %v235_v38 = vmul.f32 %v219_v34, %v219_v34  ;;  %v221_v40 = vld [vmem:[%s1005_s29 + $0x78] sm:$0xff]  ;;  %v236_v41 = vmul.f32 %v220_v37, %v220_v37 }
  0x45   : > { %v237_v43 = vmul.f32 %v221_v40, %v221_v40 }
  0x46   : > { %v240_v15 = vadd.f32 %v239_v12, %v225_v8 }
  0x48   : > { %v241_v18 = vadd.f32 %v240_v15, %v226_v11 }
  0x4a   : > { %v242_v21 = vadd.f32 %v241_v18, %v227_v14 }
  0x4c   : > { %v243_v24 = vadd.f32 %v242_v21, %v228_v17 }
  0x4e   : > { %v244_v27 = vadd.f32 %v243_v24, %v229_v20 }
  0x50   : > { %v245_v30 = vadd.f32 %v244_v27, %v230_v23 }
  0x52   : > { %v246_v33 = vadd.f32 %v245_v30, %v231_v26 }
  0x54   : > { %v247_v36 = vadd.f32 %v246_v33, %v232_v29 }
  0x56   : > { %v248_v39 = vadd.f32 %v247_v36, %v233_v32 }
  0x58   : > { %v249_v42 = vadd.f32 %v248_v39, %v234_v35 }
  0x5a   : > { %v250_v44 = vadd.f32 %v249_v42, %v235_v38 }
  0x5c   : > { %v251_v45 = vadd.f32 %v250_v44, %v236_v41 }
  0x5e   : > { %v252_v46 = vadd.f32 %v251_v45, %v237_v43 }
  0x60   : > { %v253_v47 = vrot.slane %v252_v46, 4 }
  0x62   : > { %v254_v48 = vadd.f32 %v253_v47, %v252_v46 }
  0x64   : > { %v255_v49 = vrot.slane %v254_v48, 2 }
  0x66   : > { %v256_v50 = vadd.f32 %v255_v49, %v254_v48 }
  0x68   : > { %v257_v51 = vrot.slane %v256_v50, 1 }
  0x6a   : > { %v258_v52 = vadd.f32 %v257_v51, %v256_v50 }
  0x6c   : > { %705 = vrsqrt.f32 %v258_v52 }
  0x79   : > { %v706_v53 = vpop.eup %705 }
  0x7a   : > { %v260_v54 = vmul.f32 64.0, %v706_v53 }
  0x7c   : > { %261 = vst [vmem:[#allocation2] sm:$0x1] %v260_v54 }
  0x7d PF: > { %v282_v55 = vld [vmem:[%s1005_s29 + $0x78] sm:$0xff]  ;;  %s534_s4 = sshll.u32 %s842_s18, 3  ;;  %s537_s27 = sshll.u32 %s846_s19, 7  ;;  %v864_v56 = vmov 0.0   ;;  %v281_v57 = vld [vmem:[%s1005_s29 + $0x70] sm:$0xff]  ;;  %vm865_vm0 = vmmov 0  }
  0x7e   : > { %560 = vmatprep.subr.mxu0 %v864_v56  ;;  %s265_s23 = scalar_lea.vmem %s1179_s2, %s534_s4  ;;  %v1043_v58 = vstv %s537_s27  ;;  %s368_s26 = sadd.s32 128, %s537_s27  ;;  %592 = vmatprep.mubr.msk.f32.mxu0 %vm865_vm0, %v864_v56  ;;  %v280_v60 = vld [vmem:[%s1005_s29 + $0x68] sm:$0xff]  ;;  %v279_v63 = vld [vmem:[%s1005_s29 + $0x60] sm:$0xff]  ;;  %vm373_vm5 = vcmask 7168   ;;  %v278_v1 = vld [vmem:[%s1005_s29 + $0x58] sm:$0xff] }
  0x7f   : > { %561 = vmatpush3.msra.mxu0 %v282_v55  ;;  %v369_v59 = vstv %s368_s26  ;;  %v1048_v61 = vld [vmem:[%s265_s23] sm:$0xff]  ;;  %v277_v4 = vld [vmem:[%s1005_s29 + $0x50] sm:$0xff]  ;;  %v276_v5 = vld [vmem:[%s1005_s29 + $0x48] sm:$0xff]  ;;  %s263_s21 = scalar_lea.vmem %s1177_s0, %s534_s4 }
  0x80   : > { %562 = vmatprep.subr.mxu0 %v864_v56  ;;  %vm364_vm1 = vcmp.ne.s32.totalorder %v1048_v61, 4294967295  ;;  %vm366_vm2 = vcmp.ge.s32.totalorder %v1048_v61, %v1043_v58  ;;  %vm1054_vm3 = vcmp.lt.s32.totalorder %v1048_v61, %v369_v59  ;;  %v275_v6 = vld [vmem:[%s1005_s29 + $0x40] sm:$0xff]  ;;  %v274_v7 = vld [vmem:[%s1005_s29 + $0x38] sm:$0xff]  ;;  %v273_v8 = vld [vmem:[%s1005_s29 + $0x30] sm:$0xff] }
  0x81   : > { %563 = vmatpush3.msra.mxu0 %v281_v57  ;;  %vm1060_vm4 = vmand %vm364_vm1, %vm366_vm2  ;;  %v272_v9 = vld [vmem:[%s1005_s29 + $0x28] sm:$0xff]  ;;  %v271_v10 = vld [vmem:[%s1005_s29 + $0x20] sm:$0xff] }
  0x82   : > { %564 = vmatprep.subr.mxu0 %v864_v56  ;;  %vm371_vm6 = vmand %vm1060_vm4, %vm1054_vm3  ;;  %v270_v11 = vld [vmem:[%s1005_s29 + $0x18] sm:$0xff]  ;;  %v269_v12 = vld [vmem:[%s1005_s29 + $0x10] sm:$0xff] }
  0x83   : > { %565 = vmatpush3.msra.mxu0 %v280_v60  ;;  %v372_v2 = vsel %vm371_vm6, 1.0, %v864_v56  ;;  %v268_v13 = vld [vmem:[%s1005_s29 + $0x8] sm:$0xff]  ;;  %v267_v14 = vld [vmem:[%s1005_s29] sm:$0xff]  ;;  %v535_v23 = vld [vmem:[#allocation2] ss:$0 sm:$0xff] }
  0x84   : > { %566 = vmatprep.subr.mxu0 %v864_v56  ;;  %v374_v3 = vsel %vm373_vm5, %v372_v2, -inf  ;;  %v264_v15 = vld [vmem:[%s263_s21] sm:$0xff] }
  0x85   : > { %567 = vmatpush3.msra.mxu0 %v279_v63  ;;  %375 = vmax.xlane.f32.xlu0 %v374_v3 }
  0x86   : > { %568 = vmatprep.subr.mxu0 %v864_v56 }
  0x87   : > { %569 = vmatpush3.msra.mxu0 %v278_v1 }
  0x88   : > { %570 = vmatprep.subr.mxu0 %v864_v56 }
  0x89   : > { %571 = vmatpush3.msra.mxu0 %v277_v4 }
  0x8a   : > { %572 = vmatprep.subr.mxu0 %v864_v56 }
  0x8b   : > { %573 = vmatpush3.msra.mxu0 %v276_v5 }
  0x8c   : > { %574 = vmatprep.subr.mxu0 %v864_v56 }
  0x8d   : > { %575 = vmatpush3.msra.mxu0 %v275_v6 }
  0x8e   : > { %576 = vmatprep.subr.mxu0 %v864_v56 }
  0x8f   : > { %577 = vmatpush3.msra.mxu0 %v274_v7 }
  0x90   : > { %578 = vmatprep.subr.mxu0 %v864_v56 }
  0x91   : > { %579 = vmatpush3.msra.mxu0 %v273_v8 }
  0x92   : > { %580 = vmatprep.subr.mxu0 %v864_v56 }
  0x93   : > { %581 = vmatpush3.msra.mxu0 %v272_v9 }
  0x94   : > { %582 = vmatprep.subr.mxu0 %v864_v56 }
  0x95   : > { %583 = vmatpush3.msra.mxu0 %v271_v10 }
  0x96   : > { %584 = vmatprep.subr.mxu0 %v864_v56 }
  0x97   : > { %585 = vmatpush3.msra.mxu0 %v270_v11 }
  0x98   : > { %586 = vmatprep.subr.mxu0 %v864_v56 }
  0x99   : > { %587 = vmatpush3.msra.mxu0 %v269_v12 }
  0x9a   : > { %588 = vmatprep.subr.mxu0 %v864_v56 }
  0x9b   : > { %589 = vmatpush3.msra.mxu0 %v268_v13 }
  0x9c   : > { %590 = vmatprep.subr.mxu0 %v864_v56 }
  0x9d   : > { %591 = vmatpush3.msra.mxu0 %v267_v14 }
  0x9e   : > { %593 = vmatmul.mubr.f32.vlgmr.msra.gmra.mxu0 %v264_v15 }
 0x10e   : > { %v376_v16 = vpop.xlane.xlu0 %375 }
 0x10f   : > { %v377_v17 = vrot.slane %v376_v16, 4 }
 0x111   : > { %v378_v18 = vmax.f32 %v376_v16, %v377_v17 }
 0x113   : > { %v379_v19 = vrot.slane %v378_v18, 2 }
 0x115   : > { %v380_v20 = vmax.f32 %v378_v18, %v379_v19 }
 0x117   : > { %v381_v21 = vrot.slane %v380_v20, 1 }
 0x119   : > { %v382_v22 = vmax.f32 %v380_v20, %v381_v21 }
 0x11b   : > { %595 = vpush %v382_v22 }
 0x14c   : > { %s1104_s20 = spop %595 }
 0x14d   : > { %p384_p7 = scmp.gt.f32.partialorder %s1104_s20, 0.0 }
 0x14e   : > { %v866_v28 = vmov (%p384_p7), 0   ;;  %v388_v37 = vlaneseq (%p384_p7) }
 0x14f   : > { %707 = vset.pattern.permute.xlu0 (%p384_p7), %v866_v28  ;;  %v395_v29 = vsel (%p384_p7), %vm371_vm6, 1, %v866_v28 }
 0x150   : > { %392 = vperm.xlu0 (%p384_p7), %707, %v1048_v61   ;;  %v389_v40 = vand.u32 (%p384_p7), 127, %v388_v37 }
 0x152   : > { %v390_v44 = vadd.s32 (%p384_p7), %v389_v40, %v1043_v58 }
 0x154   : > { %397 = vperm.xlu0 (%p384_p7), %707, %v395_v29  }
 0x15d   : > { %387 = sbr.rel (!%p384_p7) target bundleno = 468 (0x1d4), region = 44 }
 0x15e   : > { %v349_v24 = vpop.f32.mrf.mxu0 }
 0x15f   : > { %v360_v25 = vmul.f32 %v535_v23, %v349_v24 }
 0x160   : > { %v594_v26 = vpop.f32.mrf.mxu0 }
 0x161   : > { %v536_v27 = vclamps-f32 %v360_v25, 64.0 }
 0x163   : > { %v401_v30 = vmul.f32 0.015625, %v536_v27  ;;  %v412_v41 = vmul.f32 0.87758255, %v536_v27 }
 0x165   : > { %v402_v31 = vmul.f32 %v401_v30, %v401_v30 }
 0x167   : > { %v403_v32 = vsub.f32 1.0, %v402_v31 }
 0x169   : > { %v404_v33 = vmax.f32 %v403_v32, 0.0 }
 0x16b   : > { %708 = vrsqrt.f32 %v404_v33  ;;  %vm407_vm7 = vcmp.eq.f32.partialorder %v404_v33, inf  ;;  %v410_v36 = vand.u32 2147483648, %v404_v33  ;;  %vm409_vm8 = vcmp.eq.f32.partialorder %v404_v33, 0.0 }
 0x178   : > { %v709_v34 = vpop.eup %708 }
 0x179   : > { %v406_v35 = vmul.f32 %v709_v34, %v404_v33 }
 0x17b   : > { %v408_v38 = vsel %vm407_vm7, %v404_v33, %v406_v35 }
 0x17c   : > { %v411_v39 = vsel %vm409_vm8, %v410_v36, %v408_v38 }
 0x17d   : > { %v413_v42 = vmul.f32 30.683235, %v411_v39 }
 0x17f   : > { %v414_v45 = vsub.f32 %v412_v41, %v413_v42 }
 0x1cb   : > { %v393_v43 = vpop.permute.xlu0 %392 }
 0x1cc   : > { %vm394_vm9 = vcmp.eq.s32.totalorder %v390_v44, %v393_v43 }
 0x1cf   : > { %v398_v46 = vpop.permute.xlu0 %397 }
 0x1d0   : > { %vm399_vm10 = vcmp.eq.s32.totalorder %v398_v46, 1 }
 0x1d1   : > { %vm400_vm11 = vmand %vm399_vm10, %vm394_vm9 }
 0x1d2   : > { %v415_v47 = vsel %vm400_vm11, %v414_v45, %v536_v27 }
 0x1d3   : > { %416 = vst [vmem:[%s1014_s6] sm:$0xff] %v415_v47 }
 0x1d4 PF: > { %419 = sbr.rel (%p384_p7) target bundleno = 474 (0x1da), region = 48 }
 0x1d9   : > { %420 = vst [vmem:[%s1014_s6] sm:$0xff] %v536_v27 }
 0x1da PF: > { %s539_s15 = sshll.u32 %s842_s18, 2  ;;  %s437_s25 = sshll.u32 %s1014_s6, 4  ;;  %s438_s25 = int_to_ptr.vmem [resolvable:$true] %s437_s25 }
 0x1db   : > { %s433_s29 = sadd.s32 %s846_s19, %s539_s15  ;;  %s422_s23 = scalar_lea.sflag [#allocation5], %s199_s5 }
 0x1dc   : > { %s540_s4 = sshll.u32 %s433_s29, 7  ;;  %s738_s26 = scalar_lea.vmem %s438_s25, 128 }
 0x1dd   : > { %s435_s30 = scalar_lea.hbm %s1180_s3, %s540_s4  ;;  %p739_p6 = scmp.ne.s32.totalorder %s438_s25, %s738_s26 }
 0x1de   : > { %s867_s28 = smov [#allocation6]  }
 0x1df   : > { %p740_p8 = pnand %p739_p6, %p970_p12  ;;  %s742_s11 = sshll.u32 %s867_s28, 4  ;;  %s743_s11 = int_to_ptr.vmem [resolvable:$false] %s742_s11 }
 0x1e0   : > { %s744_s21 = scalar_lea.vmem %s743_s11, 256  ;;  %p745_p10 = scmp.lt.s32.totalorder %s438_s25, %s743_s11 }
 0x1e1   : > { %p741_p9 = pneg %p740_p8  ;;  %p746_p11 = scmp.lt.s32.totalorder %s744_s21, %s738_s26 }
 0x1e3   : > { %p747_p13 = por %p746_p11, %p745_p10 }
 0x1e5   : > { %p748_p0 = pnand %p747_p13, %p741_p9 }
 0x1e7   : > { %751 = shalt.err (!%p748_p0)
}
 0x1e8   : > { %s752_s18 = scalar_lea.hbm %s435_s30, 128  ;;  %s756_s6 = scalar_lea.hbm %s1180_s3, 1024 }
 0x1e9   : > { %p753_p3 = scmp.ne.s32.totalorder %s435_s30, %s752_s18  ;;  %p757_p4 = scmp.lt.s32.totalorder %s435_s30, %s1180_s3 }
 0x1ea   : > { %p758_p7 = scmp.lt.s32.totalorder %s756_s6, %s752_s18 }
 0x1eb   : > { %p754_p1 = pnand %p753_p3, %p970_p12 }
 0x1ec   : > { %p759_p6 = por %p758_p7, %p757_p4 }
 0x1ed   : > { %p755_p5 = pneg %p754_p1 }
 0x1ef   : > { %p760_p8 = pnand %p759_p6, %p755_p5 }
 0x1f1   : > { %763 = shalt.err (!%p760_p8)
}
 0x1f2   : > { %599 = dma.vmem_to_hbm [thread:$0]  (%p970_p12), %s438_s25, 128, %s435_s30, %s422_s23  }
 0x1f3 PF: > { %p610_p9 = scmp.ge.s32.totalorder %s858_s22, 2  ;;  %s449_s29 = sand.u32 1, %s818_s12  }
 0x1f4   : > { %s450_s4 = scalar_lea.sflag [#allocation5], %s449_s29 }
 0x1f5   : > { %p606_p10 = pnand %p610_p9, %p983_p2 }
 0x1f7   : > { %p607_p11 = pneg %p606_p10 }
 0x1f9   : > { %813 = dma.done.wait (%p607_p11), %s450_s4, 128  }
 0x1fa   : > { %815 = vsyncadd (%p607_p11), %s450_s4, 4294967168  ;;  %s19_s22 = sadd.s32 1, %s858_s22   ;;  %s1198_s18 = sld [smem:[#allocation9_spill]] }
 0x1fb   : > { %p16_p13 = scmp.ge.s32.totalorder %s19_s22, 10   ;;  %s1199_s19 = sld [smem:[#allocation10_spill]] }
 0x1fc   : > { %s1200_s20 = sld [smem:[#allocation11_spill]]  ;;  %s1202_s12 = smov %s822_s13 }
 0x1fd   : > { %s1201_s21 = sld [smem:[#allocation12_spill]]  ;;  %s1203_s13 = smov %s826_s14 }
 0x1fe   : > { %s1204_s14 = smov %s978_s9  ;;  %s1205_s15 = smov %s834_s16 }
 0x1ff   : > { %s1206_s16 = smov %s838_s17  ;;  %s1207_s17 = smov %s975_s8 }
 0x200   :  { %18 = sbr.rel (!%p16_p13) target bundleno = 9 (0x9), region = 91 }
 0x205   :  { %455 = vsyncpa [#allocation4], 1 }
 0x206   :  { %457 = vsyncpa [#allocation4 + $0x1], 1 }
 0x207   :  { %458 = vsyncpa [#allocation5], 1 }
 0x208   :  { %460 = vsyncpa [#allocation5 + $0x1], 1 }

</bundles_post_ra>
